<compile_context>
chip_gen: v7x
topology: tpu7x:2x2x1
jax: 0.10.0
libtpu: 0.0.40
codegen_flags: <defaults>
</compile_context>

<pallas_src>
import functools

import numpy as np
import jax
import jax.numpy as jnp
from jax import lax
from jax.experimental import pallas as pl
from jax.experimental.pallas import tpu as pltpu


# ------------------------------ Pallas kernel -------------------------------

def _triplet_hash_loss_kernel(bh_ref, ch_ref, pos_ref, neg_ref,
                              sim_ref, quant_ref, bal_ref, total_ref, *,
                              margin, inv_denom, inv_bl, inv_b,
                              lambda1, lambda2, lambda3):
    bh = bh_ref[...]                                   # [B, L] f32 (+-1 codes)
    ch = ch_ref[...]                                   # [B, L] f32

    def _sum_all(x):                                   # lane reduce, then sublane
        return jnp.sum(jnp.sum(x, axis=-1, keepdims=True), axis=-2, keepdims=True)

    # --- Gram matrix of the binary codes on the MXU ---
    # +-1 codes are exact in bf16, so bf16 operands + f32 accumulation is
    # lossless here and uses the fast MXU path on all of v5e/v6e/v7x.
    bh_bf = bh.astype(jnp.bfloat16)
    g = lax.dot_general(bh_bf, bh_bf,
                        (((1,), (1,)), ((), ())),       # bh @ bh.T
                        preferred_element_type=jnp.float32)        # [B, B] f32

    # --- similarity-preserving loss (hinge^2 on host-selected pairs) ---
    pos_term = pos_ref[...] * jnp.square(jnp.maximum(margin - g, 0.0))
    neg_term = neg_ref[...] * jnp.square(jnp.maximum(g + margin, 0.0))
    sim = _sum_all(pos_term + neg_term) * inv_denom                # (1, 1)

    # --- quantization loss: mean(| |c| - 1 |) ---
    quant = _sum_all(jnp.abs(jnp.abs(ch) - 1.0)) * inv_bl          # (1, 1)

    # --- bit-balance loss: sum_bits (mean over batch)^2 ---
    bit_means = jnp.sum(bh, axis=0, keepdims=True) * inv_b         # (1, L)
    bal = jnp.sum(bit_means * bit_means, axis=-1, keepdims=True)   # (1, 1)

    total = lambda1 * sim + lambda2 * quant + lambda3 * bal

    sim_ref[...] = sim
    quant_ref[...] = quant
    bal_ref[...] = bal
    total_ref[...] = total


# ------------------------- host-side pair bookkeeping ------------------------

def _build_pair_masks(positives, batch_size):
    """Trace-time replication of the PyTorch module's pair-selection logic."""
    pos_count = np.zeros((batch_size, batch_size), np.float32)
    neg_count = np.zeros((batch_size, batch_size), np.float32)
    num_pairs = 0
    if positives:
        for q_idx, db_idx in positives:
            if q_idx < batch_size and db_idx < batch_size:
                pos_count[q_idx, db_idx] += 1.0
                num_pairs += 1
    num_neg = 0
    if num_pairs > 0:
        pos_set = set((int(a), int(b)) for a, b in positives)
        done = False
        for i in range(batch_size):
            for j in range(batch_size):
                if i != j and (i, j) not in pos_set and (j, i) not in pos_set:
                    neg_count[i, j] += 1.0
                    num_neg += 1
                    if num_neg >= num_pairs:           # early break, like PyTorch
                        done = True
                        break
            if done:
                break
    return pos_count, neg_count, num_pairs, num_neg


# ----------------------- cached pallas_call construction ---------------------

@functools.lru_cache(maxsize=None)
def _build_call(B, L, margin, inv_denom, lambda1, lambda2, lambda3):
    kernel = functools.partial(
        _triplet_hash_loss_kernel,
        margin=margin,
        inv_denom=inv_denom,
        inv_bl=1.0 / float(B * L),
        inv_b=1.0 / float(B),
        lambda1=lambda1, lambda2=lambda2, lambda3=lambda3)

    call = pl.pallas_call(
        kernel,
        out_shape=[jax.ShapeDtypeStruct((1, 1), jnp.float32)] * 4,
        in_specs=[pl.BlockSpec(memory_space=pltpu.MemorySpace.VMEM)] * 4,
        out_specs=[pl.BlockSpec(memory_space=pltpu.MemorySpace.VMEM)] * 4,
    )
    return jax.jit(call)   # jitted once per (B, L, config); cached across calls


# --------------------------------- wrapper -----------------------------------

def triplet_hash_loss(binary_hash, continuous_hash, positives,
                      lambda1=1.0, lambda2=0.5, lambda3=0.1):
    """Mirrors TripletHashLoss.forward: returns (total_loss, components dict)."""
    binary_hash = jnp.asarray(binary_hash, jnp.float32)
    continuous_hash = jnp.asarray(continuous_hash, jnp.float32)
    B, L = binary_hash.shape
    margin = 0.5 * float(L)

    pos_count, neg_count, num_pairs, num_neg = _build_pair_masks(positives, B)
    denom = num_pairs + num_neg
    inv_denom = (1.0 / denom) if denom > 0 else 0.0   # masks are all-zero anyway

    call = _build_call(B, L, margin, float(inv_denom),
                       float(lambda1), float(lambda2), float(lambda3))
    sim, quant, bal, total = call(binary_hash, continuous_hash,
                                  jnp.asarray(pos_count), jnp.asarray(neg_count))

    # TODO(synk): float() below forces a host sync (mirrors PyTorch .item());
    #             keep `total` as the device scalar for jitted training loops.
    loss_components = {
        "similarity_loss": float(sim[0, 0]),
        "quantization_loss": float(quant[0, 0]),
        "bit_balance_loss": float(bal[0, 0]),
        "total_loss": float(total[0, 0]),
    }
    return total[0, 0], loss_components


# ------------------------------ pure reference --------------------------------

def _reference(bh, ch, positives, l1=1.0, l2=0.5, l3=0.1):
    """Direct numpy re-implementation of the PyTorch module (for checking)."""
    bh = np.asarray(bh, np.float64)
    ch = np.asarray(ch, np.float64)
    B, L = bh.shape
    margin = 0.5 * L
    sim = 0.0
    if positives:
        loss = 0.0
        num_pairs = 0
        for q, d in positives:
            if q < B and d < B:
                dp = float(np.sum(bh[q] * bh[d]))
                loss += max(margin - dp, 0.0) ** 2
                num_pairs += 1
        if num_pairs > 0:
            pos_set = set((int(a), int(b)) for a, b in positives)
            neg_loss = 0.0
            num_neg = 0
            done = False
            for i in range(B):
                for j in range(B):
                    if i != j and (i, j) not in pos_set and (j, i) not in pos_set:
                        dp = float(np.sum(bh[i] * bh[j]))
                        neg_loss += max(dp + margin, 0.0) ** 2
                        num_neg += 1
                        if num_neg >= num_pairs:
                            done = True
                            break
                if done:
                    break
            sim = (loss + neg_loss) / (num_pairs + num_neg)
    quant = float(np.mean(np.abs(np.abs(ch) - 1.0)))
    bal = float(np.sum(np.mean(bh, axis=0) ** 2))
    total = l1 * sim + l2 * quant + l3 * bal
    return total, sim, quant, bal


# ----------------------------------- main -------------------------------------

if __name__ == "__main__":
    key = jax.random.PRNGKey(0)
    k1, k2 = jax.random.split(key)

    B, L = 8, 32                                     # batch, hash_length
    continuous_hash = jnp.tanh(jax.random.normal(k1, (B, L), jnp.float32))
    raw = jax.random.normal(k2, (B, L), jnp.float32)
    binary_hash = jnp.where(raw >= 0, 1.0, -1.0).astype(jnp.float32)
    positives = [(0, 1), (2, 3), (4, 5)]

    total, components = triplet_hash_loss(binary_hash, continuous_hash, positives)
    jax.block_until_ready(total)

    ref_total, ref_sim, ref_quant, ref_bal = _reference(
        np.array(binary_hash), np.array(continuous_hash), positives)
    assert np.allclose(float(total), ref_total, rtol=1e-4, atol=1e-5), \
        (float(total), ref_total)
    assert np.allclose(components["similarity_loss"], ref_sim, rtol=1e-4, atol=1e-5)
    assert np.allclose(components["quantization_loss"], ref_quant, rtol=1e-4, atol=1e-5)
    assert np.allclose(components["bit_balance_loss"], ref_bal, rtol=1e-4, atol=1e-5)

    # Also exercise the empty-positives path (similarity loss must be exactly 0).
    total0, comps0 = triplet_hash_loss(binary_hash, continuous_hash, [])
    jax.block_until_ready(total0)
    ref0 = _reference(np.array(binary_hash), np.array(continuous_hash), [])
    assert np.allclose(float(total0), ref0[0], rtol=1e-4, atol=1e-5)
    assert comps0["similarity_loss"] == 0.0

    print("KERNEL_OK")
</pallas_src>

<mosaic_0001>
module attributes {stable_mosaic.version = 11 : i64} {
  func.func @_triplet_hash_loss_kernel(%arg0: memref<8x32xf32, #tpu.memory_space<vmem>>, %arg1: memref<8x32xf32, #tpu.memory_space<vmem>>, %arg2: memref<8x8xf32, #tpu.memory_space<vmem>>, %arg3: memref<8x8xf32, #tpu.memory_space<vmem>>, %arg4: memref<1x1xf32, #tpu.memory_space<vmem>>, %arg5: memref<1x1xf32, #tpu.memory_space<vmem>>, %arg6: memref<1x1xf32, #tpu.memory_space<vmem>>, %arg7: memref<1x1xf32, #tpu.memory_space<vmem>>) attributes {dimension_semantics = [], scalar_prefetch = 0 : i64, scratch_operands = 0 : i64, tpu.core_type = #tpu.core_type<tc>} {
    %c0 = arith.constant 0 : index
    %c0_0 = arith.constant 0 : index
    %0 = vector.load %arg0[%c0, %c0_0] : memref<8x32xf32, #tpu.memory_space<vmem>>, vector<8x32xf32>
    %c0_1 = arith.constant 0 : index
    %c0_2 = arith.constant 0 : index
    %1 = vector.load %arg1[%c0_1, %c0_2] : memref<8x32xf32, #tpu.memory_space<vmem>>, vector<8x32xf32>
    %2 = arith.truncf %0 : vector<8x32xf32> to vector<8x32xbf16>
    %cst = arith.constant dense<0.000000e+00> : vector<8x8xf32>
    %3 = tpu.matmul %2, %2, %cst {dimension_numbers = #tpu.dot_dimension_numbers<[1], [1], [0], [0], [0, 0, 1, 0], [], []>} : vector<8x32xbf16>, vector<8x32xbf16>, vector<8x8xf32> -> vector<8x8xf32>
    %c0_3 = arith.constant 0 : index
    %c0_4 = arith.constant 0 : index
    %4 = vector.load %arg2[%c0_3, %c0_4] : memref<8x8xf32, #tpu.memory_space<vmem>>, vector<8x8xf32>
    %cst_5 = arith.constant 1.600000e+01 : f32
    %5 = vector.broadcast %cst_5 : f32 to vector<8x8xf32>
    %6 = arith.subf %5, %3 : vector<8x8xf32>
    %cst_6 = arith.constant 0.000000e+00 : f32
    %7 = vector.broadcast %cst_6 : f32 to vector<8x8xf32>
    %8 = arith.maximumf %6, %7 : vector<8x8xf32>
    %9 = arith.mulf %8, %8 : vector<8x8xf32>
    %10 = arith.mulf %4, %9 : vector<8x8xf32>
    %c0_7 = arith.constant 0 : index
    %c0_8 = arith.constant 0 : index
    %11 = vector.load %arg3[%c0_7, %c0_8] : memref<8x8xf32, #tpu.memory_space<vmem>>, vector<8x8xf32>
    %cst_9 = arith.constant 1.600000e+01 : f32
    %12 = vector.broadcast %cst_9 : f32 to vector<8x8xf32>
    %13 = arith.addf %3, %12 : vector<8x8xf32>
    %cst_10 = arith.constant 0.000000e+00 : f32
    %14 = vector.broadcast %cst_10 : f32 to vector<8x8xf32>
    %15 = arith.maximumf %13, %14 : vector<8x8xf32>
    %16 = arith.mulf %15, %15 : vector<8x8xf32>
    %17 = arith.mulf %11, %16 : vector<8x8xf32>
    %18 = arith.addf %10, %17 : vector<8x8xf32>
    %cst_11 = arith.constant dense<0.000000e+00> : vector<8xf32>
    %19 = vector.multi_reduction <add>, %18, %cst_11 [1] : vector<8x8xf32> to vector<8xf32>
    %20 = vector.shape_cast %19 : vector<8xf32> to vector<8x1xf32>
    %cst_12 = arith.constant dense<0.000000e+00> : vector<1xf32>
    %21 = vector.multi_reduction <add>, %20, %cst_12 [0] : vector<8x1xf32> to vector<1xf32>
    %22 = vector.shape_cast %21 : vector<1xf32> to vector<1x1xf32>
    %cst_13 = arith.constant 0.166666672 : f32
    %23 = vector.broadcast %cst_13 : f32 to vector<1x1xf32>
    %24 = arith.mulf %22, %23 : vector<1x1xf32>
    %25 = math.absf %1 : vector<8x32xf32>
    %cst_14 = arith.constant 1.000000e+00 : f32
    %26 = vector.broadcast %cst_14 : f32 to vector<8x32xf32>
    %27 = arith.subf %25, %26 : vector<8x32xf32>
    %28 = math.absf %27 : vector<8x32xf32>
    %cst_15 = arith.constant dense<0.000000e+00> : vector<8xf32>
    %29 = vector.multi_reduction <add>, %28, %cst_15 [1] : vector<8x32xf32> to vector<8xf32>
    %30 = vector.shape_cast %29 : vector<8xf32> to vector<8x1xf32>
    %cst_16 = arith.constant dense<0.000000e+00> : vector<1xf32>
    %31 = vector.multi_reduction <add>, %30, %cst_16 [0] : vector<8x1xf32> to vector<1xf32>
    %32 = vector.shape_cast %31 : vector<1xf32> to vector<1x1xf32>
    %cst_17 = arith.constant 3.906250e-03 : f32
    %33 = vector.broadcast %cst_17 : f32 to vector<1x1xf32>
    %34 = arith.mulf %32, %33 : vector<1x1xf32>
    %cst_18 = arith.constant dense<0.000000e+00> : vector<32xf32>
    %35 = vector.multi_reduction <add>, %0, %cst_18 [0] : vector<8x32xf32> to vector<32xf32>
    %36 = vector.shape_cast %35 : vector<32xf32> to vector<1x32xf32>
    %cst_19 = arith.constant 1.250000e-01 : f32
    %37 = vector.broadcast %cst_19 : f32 to vector<1x32xf32>
    %38 = arith.mulf %36, %37 : vector<1x32xf32>
    %39 = arith.mulf %38, %38 : vector<1x32xf32>
    %cst_20 = arith.constant dense<0.000000e+00> : vector<1xf32>
    %40 = vector.multi_reduction <add>, %39, %cst_20 [1] : vector<1x32xf32> to vector<1xf32>
    %41 = vector.shape_cast %40 : vector<1xf32> to vector<1x1xf32>
    %cst_21 = arith.constant 1.000000e+00 : f32
    %42 = vector.broadcast %cst_21 : f32 to vector<1x1xf32>
    %43 = arith.mulf %42, %24 : vector<1x1xf32>
    %cst_22 = arith.constant 5.000000e-01 : f32
    %44 = vector.broadcast %cst_22 : f32 to vector<1x1xf32>
    %45 = arith.mulf %44, %34 : vector<1x1xf32>
    %46 = arith.addf %43, %45 : vector<1x1xf32>
    %cst_23 = arith.constant 1.000000e-01 : f32
    %47 = vector.broadcast %cst_23 : f32 to vector<1x1xf32>
    %48 = arith.mulf %47, %41 : vector<1x1xf32>
    %49 = arith.addf %46, %48 : vector<1x1xf32>
    %c0_24 = arith.constant 0 : index
    %c0_25 = arith.constant 0 : index
    %50 = vector.load %arg4[%c0_24, %c0_25] : memref<1x1xf32, #tpu.memory_space<vmem>>, vector<1x1xf32>
    tpu.vector_store %arg4[%c0_24, %c0_25], %24 {strides = array<i32>} : memref<1x1xf32, #tpu.memory_space<vmem>>, vector<1x1xf32>,
    %c0_26 = arith.constant 0 : index
    %c0_27 = arith.constant 0 : index
    %51 = vector.load %arg5[%c0_26, %c0_27] : memref<1x1xf32, #tpu.memory_space<vmem>>, vector<1x1xf32>
    tpu.vector_store %arg5[%c0_26, %c0_27], %34 {strides = array<i32>} : memref<1x1xf32, #tpu.memory_space<vmem>>, vector<1x1xf32>,
    %c0_28 = arith.constant 0 : index
    %c0_29 = arith.constant 0 : index
    %52 = vector.load %arg6[%c0_28, %c0_29] : memref<1x1xf32, #tpu.memory_space<vmem>>, vector<1x1xf32>
    tpu.vector_store %arg6[%c0_28, %c0_29], %41 {strides = array<i32>} : memref<1x1xf32, #tpu.memory_space<vmem>>, vector<1x1xf32>,
    %c0_30 = arith.constant 0 : index
    %c0_31 = arith.constant 0 : index
    %53 = vector.load %arg7[%c0_30, %c0_31] : memref<1x1xf32, #tpu.memory_space<vmem>>, vector<1x1xf32>
    tpu.vector_store %arg7[%c0_30, %c0_31], %49 {strides = array<i32>} : memref<1x1xf32, #tpu.memory_space<vmem>>, vector<1x1xf32>,
    return
  }
}

</mosaic_0001>

<bundles_post_ra>
// kernel: tpu_custom_call.1
= control target key start
LH: loop header
LB: loop body
LE: loop exit
PB: predicated region body
PF: predicated region fallthrough
CT: control target
= control target key end

     0   :  { %13 = vsyncpa [#allocation3], 0  ;;  %s548_s0 = inlined_call_operand.hbm [shape: f32[8,32], index: 0, kind: input, shape index: {}]   ;;  %s549_s1 = inlined_call_operand.hbm [shape: f32[8,32], index: 1, kind: input, shape index: {}]   ;;  %s550_s2 = inlined_call_operand.hbm [shape: f32[8,8], index: 2, kind: input, shape index: {}]   ;;  %s551_s3 = inlined_call_operand.vmem [shape: f32[8,8], index: 3, kind: input, shape index: {}]   ;;  %s552_s4 = inlined_call_operand.hbm [shape: f32[1,1], index: 4, kind: output, shape index: {0}]   ;;  %s553_s5 = inlined_call_operand.hbm [shape: f32[1,1], index: 5, kind: output, shape index: {1}]   ;;  %s554_s6 = inlined_call_operand.hbm [shape: f32[1,1], index: 6, kind: output, shape index: {2}]   ;;  %s555_s7 = inlined_call_operand.hbm [shape: f32[1,1], index: 7, kind: output, shape index: {3}]  }
   0x1   :  { %14 = vsyncpa [#allocation6], 0 }
   0x2   :  { %15 = vsyncpa [#allocation4], 0 }
   0x3   :  { %16 = vsyncpa [#allocation10], 0 }
   0x4   :  { %17 = vsyncpa [#allocation13], 0  ;;  %s403_s24 = smov [#allocation5]   ;;  %s404_s26 = smov [#allocation2]  }
   0x5   :  { %s34_s25 = sshll.u32 %s403_s24, 4  ;;  %s24_s27 = sshll.u32 %s404_s26, 4  ;;  %s35_s25 = int_to_ptr.vmem [resolvable:$true] %s34_s25  ;;  %s25_s27 = int_to_ptr.vmem [resolvable:$true] %s24_s27 }
   0x6   :  { %s239_s30 = scalar_lea.hbm %s549_s1, 128 }
   0x7   :  { %p240_p0 = scmp.ne.s32.totalorder %s549_s1, %s239_s30  ;;  %p243_p1 = scmp.lt.u32.totalorder %s239_s30, %s549_s1 }
   0x9   :  { %p245_p2 = pnand %p243_p1, %p240_p0 }
   0xb   :  { %248 = shalt.err (!%p245_p2)
}
   0xc   :  { %s249_s12 = scalar_lea.vmem %s35_s25, 128  ;;  %p254_p4 = scmp.lt.s32.totalorder %s35_s25, %s35_s25 }
   0xd   :  { %p250_p3 = scmp.ne.s32.totalorder %s35_s25, %s249_s12  ;;  %p255_p5 = scmp.lt.s32.totalorder %s249_s12, %s249_s12 }
   0xf   :  { %p256_p6 = por %p255_p5, %p254_p4 }
  0x11   :  { %p257_p7 = pnand %p256_p6, %p250_p3 }
  0x13   :  { %260 = shalt.err (!%p257_p7)
}
  0x14   :  { %37 = dma.hbm_to_vmem [thread:$0]  %s549_s1, 128, %s35_s25, [#allocation6]  }
  0x15   :  { %s261_s17 = scalar_lea.hbm %s548_s0, 128 }
  0x16   :  { %p262_p8 = scmp.ne.s32.totalorder %s548_s0, %s261_s17  ;;  %p265_p9 = scmp.lt.u32.totalorder %s261_s17, %s548_s0 }
  0x18   :  { %p267_p10 = pnand %p265_p9, %p262_p8 }
  0x1a   :  { %270 = shalt.err (!%p267_p10)
}
  0x1b   :  { %s271_s22 = scalar_lea.vmem %s25_s27, 128  ;;  %p276_p12 = scmp.lt.s32.totalorder %s25_s27, %s25_s27 }
  0x1c   :  { %p272_p11 = scmp.ne.s32.totalorder %s25_s27, %s271_s22  ;;  %p277_p13 = scmp.lt.s32.totalorder %s271_s22, %s271_s22 }
  0x1e   :  { %p278_p0 = por %p277_p13, %p276_p12 }
  0x20   :  { %p279_p1 = pnand %p278_p0, %p272_p11 }
  0x22   :  { %282 = shalt.err (!%p279_p1)
}
  0x23   :  { %27 = dma.hbm_to_vmem [thread:$0]  %s548_s0, 128, %s25_s27, [#allocation3]  }
  0x24   :  { %s405_s24 = smov [#allocation7]   ;;  %s283_s29 = scalar_lea.hbm %s550_s2, 128 }
  0x25   :  { %s44_s25 = sshll.u32 %s405_s24, 4  ;;  %p284_p2 = scmp.ne.s32.totalorder %s550_s2, %s283_s29  ;;  %s45_s25 = int_to_ptr.vmem [resolvable:$true] %s44_s25 }
  0x26   :  { %p287_p3 = scmp.lt.u32.totalorder %s283_s29, %s550_s2 }
  0x28   :  { %p289_p4 = pnand %p287_p3, %p284_p2 }
  0x2a   :  { %292 = shalt.err (!%p289_p4)
}
  0x2b   :  { %s293_s11 = scalar_lea.vmem %s45_s25, 128  ;;  %p298_p6 = scmp.lt.s32.totalorder %s45_s25, %s45_s25 }
  0x2c   :  { %p294_p5 = scmp.ne.s32.totalorder %s45_s25, %s293_s11  ;;  %p299_p7 = scmp.lt.s32.totalorder %s293_s11, %s293_s11 }
  0x2e   :  { %p300_p8 = por %p299_p7, %p298_p6 }
  0x30   :  { %p301_p9 = pnand %p300_p8, %p294_p5 }
  0x32   :  { %304 = shalt.err (!%p301_p9)
}
  0x33   :  { %47 = dma.hbm_to_vmem [thread:$0]  %s550_s2, 128, %s45_s25, [#allocation6]  }
  0x34   :  { %393 = dma.done.wait [#allocation3], 128  }
  0x35   :  { %394 = vsyncadd [#allocation3], 4294967168 }
  0x36   :  { %395 = dma.done.wait [#allocation6], 256  }
  0x37   :  { %396 = vsyncadd [#allocation6], 4294967040  ;;  %v406_v0 = vmov 0.0   ;;  %vm407_vm0 = vmmov 0   ;;  %v60_v1 = vld [vmem:[#allocation2] sm:$0xff]  ;;  %vm63_vm1 = vcmask 261120  }
  0x38   :  { %224 = vmatprep.subr.bf16.mxu0 %v406_v0  ;;  %226 = vmatprep.mubr.msk.bf16.mxu0 %vm407_vm0, %v406_v0  ;;  %v62_v2 = vpack.c.bf16 %v60_v1, %v60_v1  ;;  %v61_v4 = vld [vmem:[#allocation5] sm:$0xff]  ;;  %v142_v8 = vsel %vm63_vm1, %v60_v1, 0.0  ;;  %v107_v27 = vld [vmem:[#allocation7] sm:$0xff]  ;;  %v112_v28 = vld [vmem:[%s551_s3] sm:$0xff]  ;;  %vm118_vm2 = vcmask 64512   ;;  %vm158_vm3 = vcmask 0  }
  0x39   :  { %v129_v5 = vand.u32 2147483647, %v61_v4  ;;  %v143_v10 = vrot.slane %v142_v8, 4  ;;  %s408_s3 = smov [#allocation9]  }
  0x3a   :  { %v65_v3 = vsel %vm63_vm1, %v62_v2, 0  ;;  %s179_s13 = sshll.u32 %s408_s3, 4  ;;  %s180_s13 = int_to_ptr.vmem [resolvable:$true] %s179_s13 }
  0x3b   :  { %225 = vmatpush3.bf16.xpose.msra.mxu0 %v65_v3  ;;  %v221_v6 = vadd.f32 -1.0, %v129_v5  ;;  %v144_v11 = vadd.f32 %v143_v10, %v142_v8  ;;  %s305_s14 = scalar_lea.vmem %s180_s13, 16  ;;  %s309_s15 = scalar_lea.vmem %s180_s13, 32 }
  0x3c   :  { %p306_p10 = scmp.ne.s32.totalorder %s180_s13, %s305_s14  ;;  %p310_p11 = scmp.lt.s32.totalorder %s180_s13, %s180_s13 }
  0x3d   :  { %v131_v7 = vand.u32 2147483647, %v221_v6  ;;  %v145_v12 = vrot.slane %v144_v11, 2  ;;  %p311_p12 = scmp.lt.s32.totalorder %s309_s15, %s305_s14 }
  0x3f   :  { %v132_v9 = vsel %vm63_vm1, %v131_v7, 0.0  ;;  %v146_v13 = vadd.f32 %v145_v12, %v144_v11  ;;  %p312_p13 = por %p311_p12, %p310_p11 }
  0x40   :  { %133 = vadd.xlane.f32.xlu0 %v132_v9 }
  0x41   :  { %v147_v14 = vrot.slane %v146_v13, 1  ;;  %p313_p0 = pnand %p312_p13, %p306_p10 }
  0x42   :  { %227 = vmatmul.mubr.msk.bf16.vlgmr.msra.gmra.mrb[0].mxu0 %vm63_vm1, %v62_v2 }
  0x43   :  { %v148_v15 = vadd.f32 %v147_v14, %v146_v13 }
  0x45   :  { %v149_v16 = vmul.f32 0.125, %v148_v15 }
  0x47   :  { %v150_v17 = vmul.f32 %v149_v16, %v149_v16 }
  0x49   :  { %v151_v18 = vsel %vm63_vm1, %v150_v17, 0.0 }
  0x4a   :  { %152 = vadd.xlane.f32.xlu1 %v151_v18 }
  0xcd   :  { %v134_v35 = vpop.xlane.xlu0 %133 }
  0xce   :  { %v135_v36 = vrot.slane %v134_v35, 4 }
  0xd0   :  { %v136_v37 = vadd.f32 %v135_v36, %v134_v35 }
  0xd2   :  { %v137_v38 = vrot.slane %v136_v37, 2 }
  0xd4   :  { %v138_v39 = vadd.f32 %v137_v38, %v136_v37 }
  0xd6   :  { %v139_v40 = vrot.slane %v138_v39, 1 }
  0xd7   :  { %v153_v43 = vpop.xlane.xlu1 %152 }
  0xd8   :  { %v140_v41 = vadd.f32 %v139_v40, %v138_v39  ;;  %161 = vst.msk [vmem:[#allocation11] sm:$0x1] %vm158_vm3, %v153_v43 }
  0xda   :  { %v141_v42 = vmul.f32 0.00390625, %v140_v41 }
  0xdc   :  { %160 = vst.msk [vmem:[#allocation9] sm:$0x1] %vm158_vm3, %v141_v42 }
 0x115   :  { %v101_v19 = vpop.f32.mrb[0].mxu0 }
 0x116   :  { %v108_v20 = vsub.f32 16.0, %v101_v19  ;;  %v113_v21 = vadd.f32 16.0, %v101_v19  ;;  %v228_v22 = vpop.f32.mrb[1].mxu0 }
 0x117   :  { %v104_v23 = vpop.f32.mrb[2].mxu0 }
 0x118   :  { %v109_v24 = vmax.f32 %v108_v20, 0.0  ;;  %v114_v25 = vmax.f32 %v113_v21, 0.0  ;;  %v229_v26 = vpop.f32.mrb[3].mxu0 }
 0x11a   :  { %v110_v29 = vmul.f32 %v109_v24, %v109_v24  ;;  %v115_v30 = vmul.f32 %v114_v25, %v114_v25 }
 0x11c   :  { %v111_v31 = vmul.f32 %v110_v29, %v107_v27  ;;  %v116_v32 = vmul.f32 %v115_v30, %v112_v28 }
 0x11e   :  { %v117_v33 = vadd.f32 %v116_v32, %v111_v31 }
 0x120   :  { %v119_v34 = vsel %vm118_vm2, %v117_v33, 0.0 }
 0x121   :  { %120 = vadd.xlane.f32.xlu0 %v119_v34 }
 0x122   :  { %316 = shalt.err (!%p313_p0)
}
 0x123   :  { %s317_s18 = scalar_lea.hbm %s553_s5, 16 }
 0x124   :  { %p318_p1 = scmp.ne.s32.totalorder %s553_s5, %s317_s18  ;;  %p321_p2 = scmp.lt.u32.totalorder %s317_s18, %s553_s5 }
 0x126   :  { %p323_p3 = pnand %p321_p2, %p318_p1 }
 0x128   :  { %326 = shalt.err (!%p323_p3)
}
 0x129   :  { %182 = dma.vmem_to_hbm [thread:$0]  %s180_s13, 16, %s553_s5, [#allocation10]  }
 0x12a   :  { %s409_s24 = smov [#allocation11]  }
 0x12b   :  { %s189_s25 = sshll.u32 %s409_s24, 4  ;;  %s190_s25 = int_to_ptr.vmem [resolvable:$true] %s189_s25 }
 0x12c   :  { %s327_s26 = scalar_lea.vmem %s190_s25, 16  ;;  %s331_s28 = scalar_lea.vmem %s190_s25, 32 }
 0x12d   :  { %p328_p4 = scmp.ne.s32.totalorder %s190_s25, %s327_s26  ;;  %p332_p5 = scmp.lt.s32.totalorder %s190_s25, %s190_s25 }
 0x12e   :  { %p333_p6 = scmp.lt.s32.totalorder %s331_s28, %s327_s26 }
 0x130   :  { %p334_p7 = por %p333_p6, %p332_p5 }
 0x132   :  { %p335_p8 = pnand %p334_p7, %p328_p4 }
 0x134   :  { %338 = shalt.err (!%p335_p8)
}
 0x135   :  { %s339_s8 = scalar_lea.hbm %s554_s6, 16 }
 0x136   :  { %p340_p9 = scmp.ne.s32.totalorder %s554_s6, %s339_s8  ;;  %p343_p10 = scmp.lt.u32.totalorder %s339_s8, %s554_s6 }
 0x138   :  { %p345_p11 = pnand %p343_p10, %p340_p9 }
 0x13a   :  { %348 = shalt.err (!%p345_p11)
}
 0x13b   :  { %192 = dma.vmem_to_hbm [thread:$0]  %s190_s25, 16, %s554_s6, [#allocation10]   ;;  %v154_v52 = vmul.f32 0.5, %v141_v42  ;;  %v156_v53 = vmul.f32 0.1, %v153_v43 }
 0x13c   :  { %s410_s2 = smov [#allocation8]   ;;  %s411_s3 = smov [#allocation12]  }
 0x13d   :  { %s169_s12 = sshll.u32 %s410_s2, 4  ;;  %s199_s13 = sshll.u32 %s411_s3, 4  ;;  %s170_s12 = int_to_ptr.vmem [resolvable:$true] %s169_s12  ;;  %s200_s13 = int_to_ptr.vmem [resolvable:$true] %s199_s13 }
 0x13e   :  { %s349_s14 = scalar_lea.vmem %s170_s12, 16  ;;  %s353_s6 = scalar_lea.vmem %s170_s12, 32 }
 0x13f   :  { %p350_p12 = scmp.ne.s32.totalorder %s170_s12, %s349_s14  ;;  %p354_p13 = scmp.lt.s32.totalorder %s170_s12, %s170_s12 }
 0x140   :  { %p355_p0 = scmp.lt.s32.totalorder %s353_s6, %s349_s14 }
 0x142   :  { %p356_p1 = por %p355_p0, %p354_p13 }
 0x144   :  { %p357_p2 = pnand %p356_p1, %p350_p12 }
 0x1ae   :  { %v121_v44 = vpop.xlane.xlu0 %120 }
 0x1af   :  { %v122_v45 = vrot.slane %v121_v44, 4 }
 0x1b1   :  { %v123_v46 = vadd.f32 %v122_v45, %v121_v44 }
 0x1b3   :  { %v124_v47 = vrot.slane %v123_v46, 2 }
 0x1b5   :  { %v125_v48 = vadd.f32 %v124_v47, %v123_v46 }
 0x1b7   :  { %v126_v49 = vrot.slane %v125_v48, 1 }
 0x1b9   :  { %v127_v50 = vadd.f32 %v126_v49, %v125_v48 }
 0x1bb   :  { %v128_v51 = vmul.f32 0.16666667, %v127_v50 }
 0x1bd   :  { %v155_v54 = vadd.f32 %v154_v52, %v128_v51  ;;  %159 = vst.msk [vmem:[#allocation8] sm:$0x1] %vm158_vm3, %v128_v51 }
 0x1be   :  { %360 = shalt.err (!%p357_p2)
}
 0x1bf   :  { %s361_s17 = scalar_lea.hbm %s552_s4, 16 }
 0x1c0   :  { %p362_p3 = scmp.ne.s32.totalorder %s552_s4, %s361_s17  ;;  %p365_p4 = scmp.lt.u32.totalorder %s361_s17, %s552_s4 }
 0x1c2   :  { %p367_p5 = pnand %p365_p4, %p362_p3 }
 0x1c4   :  { %370 = shalt.err (!%p367_p5)
}
 0x1c5   :  { %172 = dma.vmem_to_hbm [thread:$0]  %s170_s12, 16, %s552_s4, [#allocation4]   ;;  %v157_v55 = vadd.f32 %v156_v53, %v155_v54 }
 0x1c6   :  { %s371_s23 = scalar_lea.vmem %s200_s13, 16  ;;  %s375_s24 = scalar_lea.vmem %s200_s13, 32 }
 0x1c7   :  { %162 = vst.msk [vmem:[#allocation12] sm:$0x1] %vm158_vm3, %v157_v55  ;;  %p372_p6 = scmp.ne.s32.totalorder %s200_s13, %s371_s23  ;;  %p376_p7 = scmp.lt.s32.totalorder %s200_s13, %s200_s13 }
 0x1c8   :  { %p377_p8 = scmp.lt.s32.totalorder %s375_s24, %s371_s23 }
 0x1ca   :  { %p378_p9 = por %p377_p8, %p376_p7 }
 0x1cc   :  { %p379_p10 = pnand %p378_p9, %p372_p6 }
 0x1ce   :  { %382 = shalt.err (!%p379_p10)
}
 0x1cf   :  { %s383_s28 = scalar_lea.hbm %s555_s7, 16 }
 0x1d0   :  { %p384_p11 = scmp.ne.s32.totalorder %s555_s7, %s383_s28  ;;  %p387_p12 = scmp.lt.u32.totalorder %s383_s28, %s555_s7 }
 0x1d2   :  { %p389_p13 = pnand %p387_p12, %p384_p11 }
 0x1d4   :  { %392 = shalt.err (!%p389_p13)
}
 0x1d5   :  { %202 = dma.vmem_to_hbm [thread:$0]  %s200_s13, 16, %s555_s7, [#allocation13]  }
 0x1d6   :  { %397 = dma.done.wait [#allocation4], 16  }
 0x1d7   :  { %398 = vsyncadd [#allocation4], 4294967280 }
 0x1d8   :  { %399 = dma.done.wait [#allocation10], 32  }
 0x1d9   :  { %400 = vsyncadd [#allocation10], 4294967264 }
 0x1da   :  { %401 = dma.done.wait [#allocation13], 16  }
 0x1db   :  { %402 = vsyncadd [#allocation13], 4294967280 }
 0x1dc   :  { %215 = vsyncpa [#allocation3], 1 }
 0x1dd   :  { %216 = vsyncpa [#allocation6], 1 }
 0x1de   :  { %217 = vsyncpa [#allocation4], 1 }
 0x1df   :  { %218 = vsyncpa [#allocation10], 1 }
 0x1e0   :  { %219 = vsyncpa [#allocation13], 1 }

</bundles_post_ra>
